<compile_context>
chip_gen: v7x
topology: tpu7x:2x2x1
jax: 0.10.0
libtpu: 0.0.40
codegen_flags: <defaults>
</compile_context>

<pallas_src>
import functools

import jax
import jax.numpy as jnp
from jax.experimental import pallas as pl
from jax.experimental.pallas import tpu as pltpu

EPS = 1e-5  # torch.nn.LayerNorm default


def _round_up(x, m):
    return (x + m - 1) // m * m


def _layernorm_lanes(x, gamma, beta, mask, inv_d):
    """LayerNorm over the last axis.

    When `mask` is given, x is zero-padded along the lane axis and the
    statistics are taken over the true `dim_emb` lanes only (inv_d=1/dim_emb);
    padded lanes stay exactly zero (gamma/beta are zero-padded too)."""
    if mask is None:
        mu = jnp.mean(x, axis=-1, keepdims=True)
        dev = x - mu
        var = jnp.mean(dev * dev, axis=-1, keepdims=True)
    else:
        mu = jnp.sum(x, axis=-1, keepdims=True) * inv_d
        dev = (x - mu) * mask
        var = jnp.sum(dev * dev, axis=-1, keepdims=True) * inv_d
    return dev * jax.lax.rsqrt(var + EPS) * gamma + beta


def _patch_encoder_kernel(
    xp_ref, side_ref,                            # row-tiled inputs
    wpp_ref, bpp_ref, g1_ref, b1_ref,            # patch_proj: Linear + LayerNorm
    wp1_ref, bp1_ref, wp2_ref, bp2_ref,          # pos_mlp: Linear, ReLU, Linear
    wsf_ref, wsc_ref, bsf_ref, g2_ref, b2_ref,   # score_fc: Linear(split), ReLU, LayerNorm
    o_ref,
    *, dim_emb, needs_mask,
):
    dp = o_ref.shape[-1]                          # padded (lane-dense) embedding width
    if needs_mask:
        lane = jax.lax.broadcasted_iota(jnp.int32, (1, dp), 1)
        mask = (lane < dim_emb).astype(jnp.float32)
    else:
        mask = None                               # dp == dim_emb: plain LayerNorm path
    inv_d = jnp.float32(1.0 / dim_emb)

    # --- patch_proj: Linear(patch_dim, D) + LayerNorm(D) ---
    h = jnp.dot(xp_ref[...], wpp_ref[...],
                preferred_element_type=jnp.float32) + bpp_ref[...]
    h = _layernorm_lanes(h, g1_ref[...], b1_ref[...], mask, inv_d)

    # --- pos_mlp: Linear(2, D) -> ReLU -> Linear(D, D) ---
    # K=2 contraction as two VPU broadcast FMAs (keeps the MXU free).
    side = side_ref[...]                          # (tm, 4) = [cx | cy | score | pad]
    w1 = wp1_ref[...]
    p = side[:, 0:1] * w1[0:1, :] + side[:, 1:2] * w1[1:2, :] + bp1_ref[...]
    p = jnp.maximum(p, 0.0)
    p = jnp.dot(p, wp2_ref[...],
                preferred_element_type=jnp.float32) + bp2_ref[...]

    f = h + p

    # --- score_fc: Linear(D+1, D) -> ReLU -> LayerNorm(D) ---
    # cat([f, s], -1) @ W  ==  f @ W[:D, :] + s * W[D, :]  (no concat materialized)
    z = (jnp.dot(f, wsf_ref[...], preferred_element_type=jnp.float32)
         + side[:, 2:3] * wsc_ref[...]
         + bsf_ref[...])
    z = jnp.maximum(z, 0.0)
    o_ref[...] = _layernorm_lanes(z, g2_ref[...], b2_ref[...], mask, inv_d)


def _vmem_bytes(tm, patch_dim, dp, xp_itemsize):
    """Per-step VMEM working set: double-buffered row streams + single-buffered
    resident weights (pl.Buffered(1))."""
    xp_b = 2 * tm * patch_dim * xp_itemsize
    side_b = 2 * tm * 4 * 4
    out_b = 2 * tm * dp * 4
    w_b = patch_dim * dp * xp_itemsize + 2 * dp * dp * 4 + 12 * dp * 4
    return xp_b + side_b + out_b + w_b


def _encode_rows(pp, xp, side, *, dim_emb, tile_m=None):
    """Run the kernel over M rows: xp (M, patch_dim), side (M, 4)."""
    m, patch_dim = xp.shape
    dp = pp["wpp"].shape[-1]
    xp_item = jnp.dtype(xp.dtype).itemsize
    align = 16 if xp_item == 2 else 8             # bf16 rows need 16-sublane tiles

    # Row tile: ~2 MiB of the dominant xp stream per grid step (amortizes the
    # ~0.35 us per-step pipeline overhead), clipped to a conservative VMEM
    # budget so the same tiling also fits v7x's 64 MiB VMEM.
    if tile_m is None:
        tile_m = max(256, min(4096, (2 << 20) // max(patch_dim * xp_item, 1)))
    tm = _round_up(tile_m, align)
    while tm > align and _vmem_bytes(tm, patch_dim, dp, xp_item) > (44 << 20):
        tm = max(align, _round_up(tm // 2, align))
    tm = min(tm, _round_up(m, align))
    # >=2 grid steps whenever possible so both v7x TensorCores get work
    # (single-TC v5e/v6e: one extra cheap step at most).
    tm = min(tm, max(align, _round_up(pl.cdiv(m, 2), align)))

    grid = (pl.cdiv(m, tm),)
    needs_mask = dp != dim_emb

    rows = lambda i: (i, 0)                       # row-tiled operands
    const = lambda i: (0, 0)                      # resident weights/biases
    single = pl.Buffered(1)                       # fetched once -> one VMEM copy

    in_specs = [
        pl.BlockSpec((tm, patch_dim), rows),
        pl.BlockSpec((tm, 4), rows),
        pl.BlockSpec((patch_dim, dp), const, pipeline_mode=single),   # wpp
        pl.BlockSpec((1, dp), const, pipeline_mode=single),           # bpp
        pl.BlockSpec((1, dp), const, pipeline_mode=single),           # g1
        pl.BlockSpec((1, dp), const, pipeline_mode=single),           # b1
        pl.BlockSpec((2, dp), const, pipeline_mode=single),           # wp1
        pl.BlockSpec((1, dp), const, pipeline_mode=single),           # bp1
        pl.BlockSpec((dp, dp), const, pipeline_mode=single),          # wp2
        pl.BlockSpec((1, dp), const, pipeline_mode=single),           # bp2
        pl.BlockSpec((dp, dp), const, pipeline_mode=single),          # wsf (W[:D])
        pl.BlockSpec((1, dp), const, pipeline_mode=single),           # wsc (W[D])
        pl.BlockSpec((1, dp), const, pipeline_mode=single),           # bsf
        pl.BlockSpec((1, dp), const, pipeline_mode=single),           # g2
        pl.BlockSpec((1, dp), const, pipeline_mode=single),           # b2
    ]

    est = _vmem_bytes(tm, patch_dim, dp, xp_item)
    # Explicit scoped-VMEM limit: v5e defaults to 16 MiB (too small at real
    # patch_dim); cap at 64 MiB so the same number is legal on v7x.
    vmem_limit = int(min(64 << 20, max(32 << 20, est * 5 // 4 + (2 << 20))))

    w_bytes = patch_dim * dp * xp_item + 2 * dp * dp * 4 + 12 * dp * 4
    cost = pl.CostEstimate(
        flops=int(2 * m * (patch_dim * dp + 2 * dp * dp) + 10 * m * dp),
        transcendentals=int(2 * m),
        bytes_accessed=int(m * (patch_dim * xp_item + 16 + dp * 4) + w_bytes),
    )

    out = pl.pallas_call(
        functools.partial(_patch_encoder_kernel, dim_emb=dim_emb,
                          needs_mask=needs_mask),
        out_shape=jax.ShapeDtypeStruct((m, dp), jnp.float32),
        grid=grid,
        in_specs=in_specs,
        out_specs=pl.BlockSpec((tm, dp), rows),
        compiler_params=pltpu.CompilerParams(
            dimension_semantics=("parallel",),
            vmem_limit_bytes=vmem_limit),
        cost_estimate=cost,
    )(xp, side,
      pp["wpp"], pp["bpp"], pp["g1"], pp["b1"],
      pp["wp1"], pp["bp1"], pp["wp2"], pp["bp2"],
      pp["wsf"], pp["wsc"], pp["bsf"], pp["g2"], pp["b2"])
    return out


def _pad_last(a, dp):
    pad = dp - a.shape[-1]
    if pad == 0:
        return a
    return jnp.pad(a, [(0, 0)] * (a.ndim - 1) + [(0, pad)])


def _pad_both(a, dp):
    pr, pc = dp - a.shape[0], dp - a.shape[1]
    if pr == 0 and pc == 0:
        return a
    return jnp.pad(a, [(0, pr), (0, pc)])


def patch_encoder(params, patches0, patches1, coords0, coords1, scores0, scores1,
                  *, tile_m=None, matmul_dtype=jnp.float32):
    dim_emb = params["g1"].shape[-1]
    dp = _round_up(dim_emb, 128)   # lane-dense; do NOT pad wider than 128.

    # Zero-pad the embedding axis to a lane-dense width (once, tiny arrays).
    pp = dict(
        wpp=_pad_last(params["wpp"], dp).astype(matmul_dtype),
        bpp=_pad_last(params["bpp"], dp),
        g1=_pad_last(params["g1"], dp), b1=_pad_last(params["b1"], dp),
        wp1=_pad_last(params["wp1"], dp), bp1=_pad_last(params["bp1"], dp),
        wp2=_pad_both(params["wp2"], dp), bp2=_pad_last(params["bp2"], dp),
        wsf=_pad_both(params["wsf"], dp), wsc=_pad_last(params["wsc"], dp),
        bsf=_pad_last(params["bsf"], dp),
        g2=_pad_last(params["g2"], dp), b2=_pad_last(params["b2"], dp),
    )

    def one_view(patches, coords, scores):
        b, n, c, h, w = patches.shape
        xp = patches.reshape(b * n, c * h * w).astype(matmul_dtype)   # free view (+ optional bf16 cast)
        side = jnp.concatenate(                                        # one small DMA per step
            [coords.reshape(b * n, 2).astype(jnp.float32),
             scores.reshape(b * n, 1).astype(jnp.float32),
             jnp.zeros((b * n, 1), jnp.float32)], axis=-1)
        out = _encode_rows(pp, xp, side, dim_emb=dim_emb, tile_m=tile_m)
        # Slice of the padded lanes fuses with the reshape/concat below
        # (no-op when dim_emb % 128 == 0).
        return out[:, :dim_emb].reshape(b, n, dim_emb)

    # No HBM concat of the big patch tensors: encode each view separately and
    # concatenate only the small (B, N, D) outputs.
    out0 = one_view(patches0, coords0, scores0)
    out1 = one_view(patches1, coords1, scores1)
    return jnp.concatenate([out0, out1], axis=1)


def init_params(key, patch_dim, dim_emb):
    ks = jax.random.split(key, 6)
    s = 0.05
    return dict(
        # weights stored as (in, out) so the kernel does x @ W
        wpp=jax.random.normal(ks[0], (patch_dim, dim_emb), jnp.float32) * s,
        bpp=jax.random.normal(ks[1], (1, dim_emb), jnp.float32) * s,
        g1=jnp.ones((1, dim_emb), jnp.float32),
        b1=jnp.zeros((1, dim_emb), jnp.float32),
        wp1=jax.random.normal(ks[2], (2, dim_emb), jnp.float32) * s,
        bp1=jax.random.normal(ks[3], (1, dim_emb), jnp.float32) * s,
        wp2=jax.random.normal(ks[4], (dim_emb, dim_emb), jnp.float32) * s,
        bp2=jnp.zeros((1, dim_emb), jnp.float32),
        wsf=jax.random.normal(ks[5], (dim_emb, dim_emb), jnp.float32) * s,   # W[:D]
        wsc=jax.random.normal(jax.random.fold_in(key, 7),
                              (1, dim_emb), jnp.float32) * s,                # W[D] (score row)
        bsf=jnp.zeros((1, dim_emb), jnp.float32),
        g2=jnp.ones((1, dim_emb), jnp.float32),
        b2=jnp.zeros((1, dim_emb), jnp.float32),
    )


def _layernorm(x, gamma, beta):
    mu = jnp.mean(x, axis=-1, keepdims=True)
    var = jnp.mean((x - mu) ** 2, axis=-1, keepdims=True)
    return (x - mu) * jax.lax.rsqrt(var + EPS) * gamma + beta


def patch_encoder_ref(params, patches0, patches1, coords0, coords1, scores0, scores1):
    # pure-JAX reference (mirrors the torch forward exactly)
    patches = jnp.concatenate([patches0, patches1], axis=1)
    coords = jnp.concatenate([coords0, coords1], axis=1)
    scores = jnp.concatenate([scores0, scores1], axis=1)
    B, N = patches.shape[:2]
    xp = patches.reshape(B, N, -1)
    h = xp @ params["wpp"] + params["bpp"]
    h = _layernorm(h, params["g1"], params["b1"])
    p = jnp.maximum(coords @ params["wp1"] + params["bp1"], 0.0)
    p = p @ params["wp2"] + params["bp2"]
    f = h + p
    z = f @ params["wsf"] + scores[..., None] * params["wsc"] + params["bsf"]
    z = jnp.maximum(z, 0.0)
    return _layernorm(z, params["g2"], params["b2"])


if __name__ == "__main__":
    B, N_half, PS, C, D = 2, 8, 4, 5, 32          # patch_dim = 5 * 4^2 = 80
    patch_dim = C * PS * PS

    key = jax.random.PRNGKey(0)
    kp0, kp1, kc0, kc1, ks0, ks1, kw = jax.random.split(key, 7)

    patches0 = jax.random.normal(kp0, (B, N_half, C, PS, PS), jnp.float32)
    patches1 = jax.random.normal(kp1, (B, N_half, C, PS, PS), jnp.float32)
    coords0 = jax.random.uniform(kc0, (B, N_half, 2), jnp.float32)
    coords1 = jax.random.uniform(kc1, (B, N_half, 2), jnp.float32)
    scores0 = jax.random.uniform(ks0, (B, N_half), jnp.float32)
    scores1 = jax.random.uniform(ks1, (B, N_half), jnp.float32)

    params = init_params(kw, patch_dim, D)
    ref = patch_encoder_ref(params, patches0, patches1, coords0, coords1,
                            scores0, scores1)

    # f32 path: matches the module numerics tightly.
    fwd = jax.jit(functools.partial(patch_encoder, matmul_dtype=jnp.float32))
    out = jax.block_until_ready(
        fwd(params, patches0, patches1, coords0, coords1, scores0, scores1))
    assert out.shape == (B, 2 * N_half, D), out.shape
    assert jnp.allclose(out, ref, atol=2e-4, rtol=2e-4), \
        float(jnp.max(jnp.abs(out - ref)))

    # bf16 fast path for the dominant xp @ wpp stream (f32 accumulation; all
    # LayerNorm / VPU math stays f32) — looser tolerance by construction.
    fwd_bf16 = jax.jit(functools.partial(patch_encoder, matmul_dtype=jnp.bfloat16))
    out_bf16 = jax.block_until_ready(
        fwd_bf16(params, patches0, patches1, coords0, coords1, scores0, scores1))
    assert out_bf16.shape == (B, 2 * N_half, D), out_bf16.shape
    assert jnp.allclose(out_bf16, ref, atol=6e-2, rtol=6e-2), \
        float(jnp.max(jnp.abs(out_bf16 - ref)))

    print("KERNEL_OK")
</pallas_src>

<mosaic_0001>
module attributes {stable_mosaic.version = 11 : i64} {
  func.func @_patch_encoder_kernel(%arg0: i32, %arg1: memref<8x80xf32, #tpu.memory_space<vmem>>, %arg2: memref<8x4xf32, #tpu.memory_space<vmem>>, %arg3: memref<80x128xf32, #tpu.memory_space<vmem>>, %arg4: memref<1x128xf32, #tpu.memory_space<vmem>>, %arg5: memref<1x128xf32, #tpu.memory_space<vmem>>, %arg6: memref<1x128xf32, #tpu.memory_space<vmem>>, %arg7: memref<2x128xf32, #tpu.memory_space<vmem>>, %arg8: memref<1x128xf32, #tpu.memory_space<vmem>>, %arg9: memref<128x128xf32, #tpu.memory_space<vmem>>, %arg10: memref<1x128xf32, #tpu.memory_space<vmem>>, %arg11: memref<128x128xf32, #tpu.memory_space<vmem>>, %arg12: memref<1x128xf32, #tpu.memory_space<vmem>>, %arg13: memref<1x128xf32, #tpu.memory_space<vmem>>, %arg14: memref<1x128xf32, #tpu.memory_space<vmem>>, %arg15: memref<1x128xf32, #tpu.memory_space<vmem>>, %arg16: memref<8x128xf32, #tpu.memory_space<vmem>>) attributes {dimension_semantics = [#tpu.dimension_semantics<parallel>], iteration_bounds = array<i64: 2>, scalar_prefetch = 0 : i64, scratch_operands = 0 : i64, tpu.core_type = #tpu.core_type<tc>, window_params = [{transform_indices = @transform_0, window_bounds = array<i64: 8, 80>}, {transform_indices = @transform_1, window_bounds = array<i64: 8, 4>}, {pipeline_mode = #tpu.pipeline_mode<synchronous>, transform_indices = @transform_2, window_bounds = array<i64: 80, 128>}, {pipeline_mode = #tpu.pipeline_mode<synchronous>, transform_indices = @transform_3, window_bounds = array<i64: 1, 128>}, {pipeline_mode = #tpu.pipeline_mode<synchronous>, transform_indices = @transform_4, window_bounds = array<i64: 1, 128>}, {pipeline_mode = #tpu.pipeline_mode<synchronous>, transform_indices = @transform_5, window_bounds = array<i64: 1, 128>}, {pipeline_mode = #tpu.pipeline_mode<synchronous>, transform_indices = @transform_6, window_bounds = array<i64: 2, 128>}, {pipeline_mode = #tpu.pipeline_mode<synchronous>, transform_indices = @transform_7, window_bounds = array<i64: 1, 128>}, {pipeline_mode = #tpu.pipeline_mode<synchronous>, transform_indices = @transform_8, window_bounds = array<i64: 128, 128>}, {pipeline_mode = #tpu.pipeline_mode<synchronous>, transform_indices = @transform_9, window_bounds = array<i64: 1, 128>}, {pipeline_mode = #tpu.pipeline_mode<synchronous>, transform_indices = @transform_10, window_bounds = array<i64: 128, 128>}, {pipeline_mode = #tpu.pipeline_mode<synchronous>, transform_indices = @transform_11, window_bounds = array<i64: 1, 128>}, {pipeline_mode = #tpu.pipeline_mode<synchronous>, transform_indices = @transform_12, window_bounds = array<i64: 1, 128>}, {pipeline_mode = #tpu.pipeline_mode<synchronous>, transform_indices = @transform_13, window_bounds = array<i64: 1, 128>}, {pipeline_mode = #tpu.pipeline_mode<synchronous>, transform_indices = @transform_14, window_bounds = array<i64: 1, 128>}, {transform_indices = @transform_15, window_bounds = array<i64: 8, 128>}]} {
    %0 = tpu.iota {dimensions = array<i32: 1>} : vector<1x128xi32>
    %c32_i32 = arith.constant 32 : i32
    %1 = vector.broadcast %c32_i32 : i32 to vector<1x128xi32>
    %2 = arith.cmpi slt, %0, %1 : vector<1x128xi32>
    %3 = arith.extui %2 : vector<1x128xi1> to vector<1x128xi32>
    %4 = arith.sitofp %3 : vector<1x128xi32> to vector<1x128xf32>
    %c0 = arith.constant 0 : index
    %c0_0 = arith.constant 0 : index
    %5 = vector.load %arg1[%c0, %c0_0] : memref<8x80xf32, #tpu.memory_space<vmem>>, vector<8x80xf32>
    %c0_1 = arith.constant 0 : index
    %c0_2 = arith.constant 0 : index
    %6 = vector.load %arg3[%c0_1, %c0_2] : memref<80x128xf32, #tpu.memory_space<vmem>>, vector<80x128xf32>
    %cst = arith.constant dense<0.000000e+00> : vector<8x128xf32>
    %7 = tpu.matmul %5, %6, %cst {dimension_numbers = #tpu.dot_dimension_numbers<[1], [0], [0], [1], [0, 0, 1, 1], [], []>} : vector<8x80xf32>, vector<80x128xf32>, vector<8x128xf32> -> vector<8x128xf32>
    %c0_3 = arith.constant 0 : index
    %c0_4 = arith.constant 0 : index
    %8 = vector.load %arg4[%c0_3, %c0_4] : memref<1x128xf32, #tpu.memory_space<vmem>>, vector<1x128xf32>
    %9 = vector.broadcast %8 : vector<1x128xf32> to vector<8x128xf32>
    %10 = arith.addf %7, %9 : vector<8x128xf32>
    %c0_5 = arith.constant 0 : index
    %c0_6 = arith.constant 0 : index
    %11 = vector.load %arg5[%c0_5, %c0_6] : memref<1x128xf32, #tpu.memory_space<vmem>>, vector<1x128xf32>
    %c0_7 = arith.constant 0 : index
    %c0_8 = arith.constant 0 : index
    %12 = vector.load %arg6[%c0_7, %c0_8] : memref<1x128xf32, #tpu.memory_space<vmem>>, vector<1x128xf32>
    %cst_9 = arith.constant dense<0.000000e+00> : vector<8xf32>
    %13 = vector.multi_reduction <add>, %10, %cst_9 [1] : vector<8x128xf32> to vector<8xf32>
    %14 = vector.shape_cast %13 : vector<8xf32> to vector<8x1xf32>
    %cst_10 = arith.constant 3.125000e-02 : f32
    %15 = vector.broadcast %cst_10 : f32 to vector<8x1xf32>
    %16 = arith.mulf %14, %15 : vector<8x1xf32>
    %17 = vector.broadcast %16 : vector<8x1xf32> to vector<8x128xf32>
    %18 = arith.subf %10, %17 : vector<8x128xf32>
    %19 = vector.broadcast %4 : vector<1x128xf32> to vector<8x128xf32>
    %20 = arith.mulf %18, %19 : vector<8x128xf32>
    %21 = arith.mulf %20, %20 : vector<8x128xf32>
    %cst_11 = arith.constant dense<0.000000e+00> : vector<8xf32>
    %22 = vector.multi_reduction <add>, %21, %cst_11 [1] : vector<8x128xf32> to vector<8xf32>
    %23 = vector.shape_cast %22 : vector<8xf32> to vector<8x1xf32>
    %cst_12 = arith.constant 3.125000e-02 : f32
    %24 = vector.broadcast %cst_12 : f32 to vector<8x1xf32>
    %25 = arith.mulf %23, %24 : vector<8x1xf32>
    %cst_13 = arith.constant 9.99999974E-6 : f32
    %26 = vector.broadcast %cst_13 : f32 to vector<8x1xf32>
    %27 = arith.addf %25, %26 : vector<8x1xf32>
    %28 = math.rsqrt %27 : vector<8x1xf32>
    %29 = vector.broadcast %28 : vector<8x1xf32> to vector<8x128xf32>
    %30 = arith.mulf %20, %29 : vector<8x128xf32>
    %31 = vector.broadcast %11 : vector<1x128xf32> to vector<8x128xf32>
    %32 = arith.mulf %30, %31 : vector<8x128xf32>
    %33 = vector.broadcast %12 : vector<1x128xf32> to vector<8x128xf32>
    %34 = arith.addf %32, %33 : vector<8x128xf32>
    %c0_14 = arith.constant 0 : index
    %c0_15 = arith.constant 0 : index
    %35 = vector.load %arg2[%c0_14, %c0_15] : memref<8x4xf32, #tpu.memory_space<vmem>>, vector<8x4xf32>
    %c0_16 = arith.constant 0 : index
    %c0_17 = arith.constant 0 : index
    %36 = vector.load %arg7[%c0_16, %c0_17] : memref<2x128xf32, #tpu.memory_space<vmem>>, vector<2x128xf32>
    %37 = vector.extract_strided_slice %35 {offsets = [0, 0], sizes = [8, 1], strides = [1, 1]} : vector<8x4xf32> to vector<8x1xf32>
    %38 = vector.extract_strided_slice %36 {offsets = [0, 0], sizes = [1, 128], strides = [1, 1]} : vector<2x128xf32> to vector<1x128xf32>
    %39 = vector.broadcast %37 : vector<8x1xf32> to vector<8x128xf32>
    %40 = vector.broadcast %38 : vector<1x128xf32> to vector<8x128xf32>
    %41 = arith.mulf %39, %40 : vector<8x128xf32>
    %42 = vector.extract_strided_slice %35 {offsets = [0, 1], sizes = [8, 1], strides = [1, 1]} : vector<8x4xf32> to vector<8x1xf32>
    %43 = vector.extract_strided_slice %36 {offsets = [1, 0], sizes = [1, 128], strides = [1, 1]} : vector<2x128xf32> to vector<1x128xf32>
    %44 = vector.broadcast %42 : vector<8x1xf32> to vector<8x128xf32>
    %45 = vector.broadcast %43 : vector<1x128xf32> to vector<8x128xf32>
    %46 = arith.mulf %44, %45 : vector<8x128xf32>
    %47 = arith.addf %41, %46 : vector<8x128xf32>
    %c0_18 = arith.constant 0 : index
    %c0_19 = arith.constant 0 : index
    %48 = vector.load %arg8[%c0_18, %c0_19] : memref<1x128xf32, #tpu.memory_space<vmem>>, vector<1x128xf32>
    %49 = vector.broadcast %48 : vector<1x128xf32> to vector<8x128xf32>
    %50 = arith.addf %47, %49 : vector<8x128xf32>
    %cst_20 = arith.constant 0.000000e+00 : f32
    %51 = vector.broadcast %cst_20 : f32 to vector<8x128xf32>
    %52 = arith.maximumf %50, %51 : vector<8x128xf32>
    %c0_21 = arith.constant 0 : index
    %c0_22 = arith.constant 0 : index
    %53 = vector.load %arg9[%c0_21, %c0_22] : memref<128x128xf32, #tpu.memory_space<vmem>>, vector<128x128xf32>
    %cst_23 = arith.constant dense<0.000000e+00> : vector<8x128xf32>
    %54 = tpu.matmul %52, %53, %cst_23 {dimension_numbers = #tpu.dot_dimension_numbers<[1], [0], [0], [1], [0, 0, 1, 1], [], []>} : vector<8x128xf32>, vector<128x128xf32>, vector<8x128xf32> -> vector<8x128xf32>
    %c0_24 = arith.constant 0 : index
    %c0_25 = arith.constant 0 : index
    %55 = vector.load %arg10[%c0_24, %c0_25] : memref<1x128xf32, #tpu.memory_space<vmem>>, vector<1x128xf32>
    %56 = vector.broadcast %55 : vector<1x128xf32> to vector<8x128xf32>
    %57 = arith.addf %54, %56 : vector<8x128xf32>
    %58 = arith.addf %34, %57 : vector<8x128xf32>
    %c0_26 = arith.constant 0 : index
    %c0_27 = arith.constant 0 : index
    %59 = vector.load %arg11[%c0_26, %c0_27] : memref<128x128xf32, #tpu.memory_space<vmem>>, vector<128x128xf32>
    %cst_28 = arith.constant dense<0.000000e+00> : vector<8x128xf32>
    %60 = tpu.matmul %58, %59, %cst_28 {dimension_numbers = #tpu.dot_dimension_numbers<[1], [0], [0], [1], [0, 0, 1, 1], [], []>} : vector<8x128xf32>, vector<128x128xf32>, vector<8x128xf32> -> vector<8x128xf32>
    %61 = vector.extract_strided_slice %35 {offsets = [0, 2], sizes = [8, 1], strides = [1, 1]} : vector<8x4xf32> to vector<8x1xf32>
    %c0_29 = arith.constant 0 : index
    %c0_30 = arith.constant 0 : index
    %62 = vector.load %arg12[%c0_29, %c0_30] : memref<1x128xf32, #tpu.memory_space<vmem>>, vector<1x128xf32>
    %63 = vector.broadcast %61 : vector<8x1xf32> to vector<8x128xf32>
    %64 = vector.broadcast %62 : vector<1x128xf32> to vector<8x128xf32>
    %65 = arith.mulf %63, %64 : vector<8x128xf32>
    %66 = arith.addf %60, %65 : vector<8x128xf32>
    %c0_31 = arith.constant 0 : index
    %c0_32 = arith.constant 0 : index
    %67 = vector.load %arg13[%c0_31, %c0_32] : memref<1x128xf32, #tpu.memory_space<vmem>>, vector<1x128xf32>
    %68 = vector.broadcast %67 : vector<1x128xf32> to vector<8x128xf32>
    %69 = arith.addf %66, %68 : vector<8x128xf32>
    %cst_33 = arith.constant 0.000000e+00 : f32
    %70 = vector.broadcast %cst_33 : f32 to vector<8x128xf32>
    %71 = arith.maximumf %69, %70 : vector<8x128xf32>
    %c0_34 = arith.constant 0 : index
    %c0_35 = arith.constant 0 : index
    %72 = vector.load %arg14[%c0_34, %c0_35] : memref<1x128xf32, #tpu.memory_space<vmem>>, vector<1x128xf32>
    %c0_36 = arith.constant 0 : index
    %c0_37 = arith.constant 0 : index
    %73 = vector.load %arg15[%c0_36, %c0_37] : memref<1x128xf32, #tpu.memory_space<vmem>>, vector<1x128xf32>
    %cst_38 = arith.constant dense<0.000000e+00> : vector<8xf32>
    %74 = vector.multi_reduction <add>, %71, %cst_38 [1] : vector<8x128xf32> to vector<8xf32>
    %75 = vector.shape_cast %74 : vector<8xf32> to vector<8x1xf32>
    %cst_39 = arith.constant 3.125000e-02 : f32
    %76 = vector.broadcast %cst_39 : f32 to vector<8x1xf32>
    %77 = arith.mulf %75, %76 : vector<8x1xf32>
    %78 = vector.broadcast %77 : vector<8x1xf32> to vector<8x128xf32>
    %79 = arith.subf %71, %78 : vector<8x128xf32>
    %80 = vector.broadcast %4 : vector<1x128xf32> to vector<8x128xf32>
    %81 = arith.mulf %79, %80 : vector<8x128xf32>
    %82 = arith.mulf %81, %81 : vector<8x128xf32>
    %cst_40 = arith.constant dense<0.000000e+00> : vector<8xf32>
    %83 = vector.multi_reduction <add>, %82, %cst_40 [1] : vector<8x128xf32> to vector<8xf32>
    %84 = vector.shape_cast %83 : vector<8xf32> to vector<8x1xf32>
    %cst_41 = arith.constant 3.125000e-02 : f32
    %85 = vector.broadcast %cst_41 : f32 to vector<8x1xf32>
    %86 = arith.mulf %84, %85 : vector<8x1xf32>
    %cst_42 = arith.constant 9.99999974E-6 : f32
    %87 = vector.broadcast %cst_42 : f32 to vector<8x1xf32>
    %88 = arith.addf %86, %87 : vector<8x1xf32>
    %89 = math.rsqrt %88 : vector<8x1xf32>
    %90 = vector.broadcast %89 : vector<8x1xf32> to vector<8x128xf32>
    %91 = arith.mulf %81, %90 : vector<8x128xf32>
    %92 = vector.broadcast %72 : vector<1x128xf32> to vector<8x128xf32>
    %93 = arith.mulf %91, %92 : vector<8x128xf32>
    %94 = vector.broadcast %73 : vector<1x128xf32> to vector<8x128xf32>
    %95 = arith.addf %93, %94 : vector<8x128xf32>
    %c0_43 = arith.constant 0 : index
    %c0_44 = arith.constant 0 : index
    %96 = vector.load %arg16[%c0_43, %c0_44] : memref<8x128xf32, #tpu.memory_space<vmem>>, vector<8x128xf32>
    tpu.vector_store %arg16[%c0_43, %c0_44], %95 {strides = array<i32>} : memref<8x128xf32, #tpu.memory_space<vmem>>, vector<8x128xf32>,
    return
  }
  func.func @transform_0(%arg0: i32) -> (i32, i32) {
    %c0_i32 = arith.constant 0 : i32
    %c0_i32_0 = arith.constant 0 : i32
    return %arg0, %c0_i32 : i32, i32
  }
  func.func @transform_1(%arg0: i32) -> (i32, i32) {
    %c0_i32 = arith.constant 0 : i32
    %c0_i32_0 = arith.constant 0 : i32
    return %arg0, %c0_i32 : i32, i32
  }
  func.func @transform_2(%arg0: i32) -> (i32, i32) {
    %c0_i32 = arith.constant 0 : i32
    %c0_i32_0 = arith.constant 0 : i32
    %c0_i32_1 = arith.constant 0 : i32
    return %c0_i32, %c0_i32_0 : i32, i32
  }
  func.func @transform_3(%arg0: i32) -> (i32, i32) {
    %c0_i32 = arith.constant 0 : i32
    %c0_i32_0 = arith.constant 0 : i32
    %c0_i32_1 = arith.constant 0 : i32
    return %c0_i32, %c0_i32_0 : i32, i32
  }
  func.func @transform_4(%arg0: i32) -> (i32, i32) {
    %c0_i32 = arith.constant 0 : i32
    %c0_i32_0 = arith.constant 0 : i32
    %c0_i32_1 = arith.constant 0 : i32
    return %c0_i32, %c0_i32_0 : i32, i32
  }
  func.func @transform_5(%arg0: i32) -> (i32, i32) {
    %c0_i32 = arith.constant 0 : i32
    %c0_i32_0 = arith.constant 0 : i32
    %c0_i32_1 = arith.constant 0 : i32
    return %c0_i32, %c0_i32_0 : i32, i32
  }
  func.func @transform_6(%arg0: i32) -> (i32, i32) {
    %c0_i32 = arith.constant 0 : i32
    %c0_i32_0 = arith.constant 0 : i32
    %c0_i32_1 = arith.constant 0 : i32
    return %c0_i32, %c0_i32_0 : i32, i32
  }
  func.func @transform_7(%arg0: i32) -> (i32, i32) {
    %c0_i32 = arith.constant 0 : i32
    %c0_i32_0 = arith.constant 0 : i32
    %c0_i32_1 = arith.constant 0 : i32
    return %c0_i32, %c0_i32_0 : i32, i32
  }
  func.func @transform_8(%arg0: i32) -> (i32, i32) {
    %c0_i32 = arith.constant 0 : i32
    %c0_i32_0 = arith.constant 0 : i32
    %c0_i32_1 = arith.constant 0 : i32
    return %c0_i32, %c0_i32_0 : i32, i32
  }
  func.func @transform_9(%arg0: i32) -> (i32, i32) {
    %c0_i32 = arith.constant 0 : i32
    %c0_i32_0 = arith.constant 0 : i32
    %c0_i32_1 = arith.constant 0 : i32
    return %c0_i32, %c0_i32_0 : i32, i32
  }
  func.func @transform_10(%arg0: i32) -> (i32, i32) {
    %c0_i32 = arith.constant 0 : i32
    %c0_i32_0 = arith.constant 0 : i32
    %c0_i32_1 = arith.constant 0 : i32
    return %c0_i32, %c0_i32_0 : i32, i32
  }
  func.func @transform_11(%arg0: i32) -> (i32, i32) {
    %c0_i32 = arith.constant 0 : i32
    %c0_i32_0 = arith.constant 0 : i32
    %c0_i32_1 = arith.constant 0 : i32
    return %c0_i32, %c0_i32_0 : i32, i32
  }
  func.func @transform_12(%arg0: i32) -> (i32, i32) {
    %c0_i32 = arith.constant 0 : i32
    %c0_i32_0 = arith.constant 0 : i32
    %c0_i32_1 = arith.constant 0 : i32
    return %c0_i32, %c0_i32_0 : i32, i32
  }
  func.func @transform_13(%arg0: i32) -> (i32, i32) {
    %c0_i32 = arith.constant 0 : i32
    %c0_i32_0 = arith.constant 0 : i32
    %c0_i32_1 = arith.constant 0 : i32
    return %c0_i32, %c0_i32_0 : i32, i32
  }
  func.func @transform_14(%arg0: i32) -> (i32, i32) {
    %c0_i32 = arith.constant 0 : i32
    %c0_i32_0 = arith.constant 0 : i32
    %c0_i32_1 = arith.constant 0 : i32
    return %c0_i32, %c0_i32_0 : i32, i32
  }
  func.func @transform_15(%arg0: i32) -> (i32, i32) {
    %c0_i32 = arith.constant 0 : i32
    %c0_i32_0 = arith.constant 0 : i32
    return %arg0, %c0_i32 : i32, i32
  }
}

</mosaic_0001>

<bundles_post_ra>
// kernel: patch_encoder.3
= control target key start
LH: loop header
LB: loop body
LE: loop exit
PB: predicated region body
PF: predicated region fallthrough
CT: control target
= control target key end

     0   :  { %s1296_s18 = smov 0   ;;  %s1514_s0 = inlined_call_operand.vmem [shape: f32[16,80], index: 0, kind: input, shape index: {}]   ;;  %s1515_s1 = inlined_call_operand.vmem [shape: f32[16,4], index: 1, kind: input, shape index: {}]   ;;  %s1516_s2 = inlined_call_operand.vmem [shape: f32[80,128], index: 2, kind: input, shape index: {}]   ;;  %s1517_s3 = inlined_call_operand.vmem [shape: f32[1,128], index: 3, kind: input, shape index: {}]   ;;  %s1518_s4 = inlined_call_operand.vmem [shape: f32[1,128], index: 4, kind: input, shape index: {}]   ;;  %s1519_s5 = inlined_call_operand.vmem [shape: f32[1,128], index: 5, kind: input, shape index: {}]   ;;  %s1520_s6 = inlined_call_operand.vmem [shape: f32[2,128], index: 6, kind: input, shape index: {}]   ;;  %s1521_s7 = inlined_call_operand.vmem [shape: f32[1,128], index: 7, kind: input, shape index: {}]   ;;  %s1522_s8 = inlined_call_operand.vmem [shape: f32[128,128], index: 8, kind: input, shape index: {}]   ;;  %s1523_s9 = inlined_call_operand.vmem [shape: f32[1,128], index: 9, kind: input, shape index: {}]   ;;  %s1524_s10 = inlined_call_operand.vmem [shape: f32[128,128], index: 10, kind: input, shape index: {}]   ;;  %s1525_s11 = inlined_call_operand.vmem [shape: f32[1,128], index: 11, kind: input, shape index: {}]   ;;  %s1526_s12 = inlined_call_operand.vmem [shape: f32[1,128], index: 12, kind: input, shape index: {}]   ;;  %s1527_s13 = inlined_call_operand.vmem [shape: f32[1,128], index: 13, kind: input, shape index: {}]   ;;  %s1528_s14 = inlined_call_operand.vmem [shape: f32[1,128], index: 14, kind: input, shape index: {}]   ;;  %s1529_s15 = inlined_call_operand.vmem [shape: f32[16,128], index: 15, kind: output, shape index: {}]  }
   0x1 LB: > { %s958_s19 = sadd.s32 4294967295, %s1208_s18   ;;  %p962_p0 = scmp.ge.s32.totalorder %s1208_s18, 1  ;;  %s1208_s18 = sphi %s1296_s18, %s25_s18  }
   0x2   : > { %p445_p1 = scmp.lt.s32.totalorder %s1208_s18, 3 }
   0x4   : > { %p446_p2 = pnand %p962_p0, %p445_p1 }
   0x5   : > { %v513_v0 = vld [vmem:[%s1516_s2] sm:$0xff] (!%p446_p2)  ;;  %v514_v1 = vld [vmem:[%s1516_s2 + $0x8] sm:$0xff] (!%p446_p2)  ;;  %v515_v2 = vld [vmem:[%s1516_s2 + $0x10] sm:$0xff] (!%p446_p2)  ;;  %v1210_v3 = vmov (!%p446_p2), 0.0|0.0   ;;  %vm1211_vm0 = vmmov (!%p446_p2), 0   ;;  %v1212_v6 = vmov (!%p446_p2), 0.0   ;;  %v507_v36 = vlaneseq (!%p446_p2) }
   0x6   : > { %449 = sbr.rel (%p446_p2) target bundleno = 1088 (0x440), region = 80  ;;  %1117 = vmatprep.subr.bf16.mxu0 (!%p446_p2), %v1210_v3  ;;  %v1118_v4 = vpack.c.bf16 (!%p446_p2), %v514_v1, %v513_v0  ;;  %v516_v5 = vld [vmem:[%s1516_s2 + $0x18] sm:$0xff] (!%p446_p2)  ;;  %1044 = vmatprep.mubr.msk.f32.mxu0 (!%p446_p2), %vm1211_vm0, %v1212_v6  ;;  %p495_p3 = scmp.lt.s32.totalorder (!%p446_p2), %s958_s19, 1  ;;  %v1213_v7 = vmov (!%p446_p2), 0   ;;  %v517_v9 = vld [vmem:[%s1516_s2 + $0x20] sm:$0xff] (!%p446_p2)  ;;  %v518_v10 = vld [vmem:[%s1516_s2 + $0x28] sm:$0xff] (!%p446_p2) }
   0x7   : > { %1194 = vset.pattern.permute.xlu0 (!%p446_p2), %v1213_v7  ;;  %1132 = vmatprep.subr.bf16.mxu1 (!%p446_p2), %v1210_v3  ;;  %v1121_v8 = vpack.c.bf16 (!%p446_p2), %v516_v5, %v515_v2  ;;  %v1124_v11 = vpack.c.bf16 (!%p446_p2), %v518_v10, %v517_v9  ;;  %v519_v12 = vld [vmem:[%s1516_s2 + $0x30] sm:$0xff] (!%p446_p2)  ;;  %v520_v13 = vld [vmem:[%s1516_s2 + $0x38] sm:$0xff] (!%p446_p2)  ;;  %v521_v16 = vld [vmem:[%s1516_s2 + $0x40] sm:$0xff] (!%p446_p2)  ;;  %v1214_v18 = vmov (!%p446_p2), 1   ;;  %vm530_vm1 = vcmask (!%p446_p2), 654336  }
   0x8   : > { %1119 = vmatpush3.bf16.msra.mxu0 (!%p446_p2), %v1118_v4  ;;  %1079 = vmatprep.mubr.msk.f32.mxu1 (!%p446_p2), %vm1211_vm0, %v1212_v6  ;;  %v1127_v15 = vpack.c.bf16 (!%p446_p2), %v520_v13, %v519_v12  ;;  %v522_v17 = vld [vmem:[%s1516_s2 + $0x48] sm:$0xff] (!%p446_p2)  ;;  %v663_v21 = vld [vmem:[%s1522_s8] sm:$0xff] (!%p446_p2)  ;;  %v665_v23 = vld [vmem:[%s1522_s8 + $0x10] sm:$0xff] (!%p446_p2)  ;;  %v640_v40 = vshrl.u32 (!%p446_p2), %v507_v36, 7 }
   0x9   : > { %1120 = vmatprep.subr.bf16.mxu0 (!%p446_p2), %v1210_v3  ;;  %v1130_v19 = vpack.c.bf16 (!%p446_p2), %v522_v17, %v521_v16  ;;  %v664_v22 = vld [vmem:[%s1522_s8 + $0x8] sm:$0xff] (!%p446_p2)  ;;  %v666_v25 = vld [vmem:[%s1522_s8 + $0x18] sm:$0xff] (!%p446_p2)  ;;  %v667_v27 = vld [vmem:[%s1522_s8 + $0x20] sm:$0xff] (!%p446_p2) }
   0xa   : > { %v1133_v24 = vpack.c.bf16 (!%p446_p2), %v664_v22, %v663_v21  ;;  %v1136_v26 = vpack.c.bf16 (!%p446_p2), %v666_v25, %v665_v23  ;;  %v668_v28 = vld [vmem:[%s1522_s8 + $0x28] sm:$0xff] (!%p446_p2)  ;;  %v669_v30 = vld [vmem:[%s1522_s8 + $0x30] sm:$0xff] (!%p446_p2)  ;;  %v670_v31 = vld [vmem:[%s1522_s8 + $0x38] sm:$0xff] (!%p446_p2)  ;;  %v641_v44 = vsub.s32 (!%p446_p2), 0, %v640_v40  ;;  %v650_v48 = vsub.s32 (!%p446_p2), 1, %v640_v40 }
   0xb   : > { %v1139_v29 = vpack.c.bf16 (!%p446_p2), %v668_v28, %v667_v27  ;;  %v1142_v32 = vpack.c.bf16 (!%p446_p2), %v670_v31, %v669_v30  ;;  %v671_v33 = vld [vmem:[%s1522_s8 + $0x40] sm:$0xff] (!%p446_p2)  ;;  %v672_v34 = vld [vmem:[%s1522_s8 + $0x48] sm:$0xff] (!%p446_p2)  ;;  %v673_v37 = vld [vmem:[%s1522_s8 + $0x50] sm:$0xff] (!%p446_p2) }
   0xc   : > { %1122 = vmatpush3.bf16.msra.mxu0 (!%p446_p2), %v1121_v8  ;;  %1134 = vmatpush3.bf16.msra.mxu1 (!%p446_p2), %v1133_v24  ;;  %v1145_v35 = vpack.c.bf16 (!%p446_p2), %v672_v34, %v671_v33  ;;  %v674_v38 = vld [vmem:[%s1522_s8 + $0x58] sm:$0xff] (!%p446_p2)  ;;  %v675_v41 = vld [vmem:[%s1522_s8 + $0x60] sm:$0xff] (!%p446_p2)  ;;  %v676_v42 = vld [vmem:[%s1522_s8 + $0x68] sm:$0xff] (!%p446_p2)  ;;  %v508_v8 = vand.u32 (!%p446_p2), 127, %v507_v36 }
   0xd   : > { %s1531_s19 = smov (!%p495_p3, %s958_s19), 1  ;;  %1123 = vmatprep.subr.bf16.mxu0 %v1210_v3  ;;  %1135 = vmatprep.subr.bf16.mxu1 %v1210_v3  ;;  %v1148_v39 = vpack.c.bf16 %v674_v38, %v673_v37  ;;  %v1151_v43 = vpack.c.bf16 %v676_v42, %v675_v41  ;;  %v677_v45 = vld [vmem:[%s1522_s8 + $0x70] sm:$0xff]  ;;  %v678_v46 = vld [vmem:[%s1522_s8 + $0x78] sm:$0xff]  ;;  %v633_v47 = vld [vmem:[%s1520_s6] sm:$0x3] }
   0xe   : > { %s1329_s17 = sshll.u32 %s1531_s19, 3  ;;  %v1154_v49 = vpack.c.bf16 %v678_v46, %v677_v45  ;;  %v642_v50 = vrot.slane %v633_v47, %v641_v44  ;;  %v651_v52 = vrot.slane %v633_v47, %v650_v48  ;;  %v971_v56 = vld [vmem:[%s1521_s7] ss:$0 sm:$0xff]  ;;  %v758_v1 = vld [vmem:[%s1524_s10 + $0x8] sm:$0xff]  ;;  %v759_v2 = vld [vmem:[%s1524_s10 + $0x10] sm:$0xff]  ;;  %vm509_vm2 = vcmp.lt.s32.totalorder %v508_v8, 32 }
   0xf   : > { %s502_s22 = scalar_lea.vmem %s1515_s1, %s1329_s17  ;;  %s498_s20 = scalar_lea.vmem %s1514_s0, %s1329_s17  ;;  %v967_v60 = vld [vmem:[%s1517_s3] ss:$0 sm:$0xff]  ;;  %v760_v5 = vld [vmem:[%s1524_s10 + $0x18] sm:$0xff]  ;;  %v762_v17 = vld [vmem:[%s1524_s10 + $0x28] sm:$0xff] }
  0x10   : > { %v1342_v14 = vld [vmem:[%s502_s22] sm:$0xff]  ;;  %1125 = vmatpush3.bf16.msra.mxu0 %v1124_v11  ;;  %1137 = vmatpush3.bf16.msra.mxu1 %v1136_v26  ;;  %v1160_v7 = vpack.c.bf16 %v760_v5, %v759_v2  ;;  %v1440_v11 = vsel %vm509_vm2, 1.0, %v1212_v6  ;;  %v766_v22 = vld [vmem:[%s1524_s10 + $0x48] sm:$0xff]  ;;  %v767_v24 = vld [vmem:[%s1524_s10 + $0x50] sm:$0xff]  ;;  %s506_s28 = scalar_lea.vmem %s1529_s15, %s1329_s17 }
  0x11   : > { %636 = vperm.xlu0 %1194, %v1342_v14   ;;  %1126 = vmatprep.subr.bf16.mxu0 %v1210_v3  ;;  %v512_v20 = vld [vmem:[%s498_s20] sm:$0xff]  ;;  %v768_v25 = vld [vmem:[%s1524_s10 + $0x58] sm:$0xff]  ;;  %v770_v30 = vld [vmem:[%s1524_s10 + $0x68] sm:$0xff] }
  0x12   : > { %1138 = vmatprep.subr.bf16.mxu1 %v1210_v3  ;;  %v757_v0 = vld [vmem:[%s1524_s10] sm:$0xff]  ;;  %v1172_v26 = vpack.c.bf16 %v768_v25, %v767_v24  ;;  %v772_v33 = vld [vmem:[%s1524_s10 + $0x78] sm:$0xff] }
  0x13   : > { %v1157_v4 = vpack.c.bf16 %v758_v1, %v757_v0  ;;  %v761_v16 = vld [vmem:[%s1524_s10 + $0x20] sm:$0xff] }
  0x14   : > { %1128 = vmatpush3.bf16.msra.mxu0 %v1127_v15  ;;  %1140 = vmatpush3.bf16.msra.mxu1 %v1139_v29  ;;  %v765_v21 = vld [vmem:[%s1524_s10 + $0x40] sm:$0xff] }
  0x15   : > { %1195 = vset.pattern.permute.xlu0 %v1214_v18  ;;  %1129 = vmatprep.subr.bf16.mxu0 %v1210_v3  ;;  %v1163_v18 = vpack.c.bf16 %v762_v17, %v761_v16  ;;  %v1169_v23 = vpack.c.bf16 %v766_v22, %v765_v21  ;;  %v769_v29 = vld [vmem:[%s1524_s10 + $0x60] sm:$0xff] }
  0x16   : > { %645 = vperm.xlu0 %1195, %v1342_v14   ;;  %1141 = vmatprep.subr.bf16.mxu1 %v1210_v3  ;;  %v1175_v31 = vpack.c.bf16 %v770_v30, %v769_v29  ;;  %v970_v41 = vld [vmem:[%s1519_s5] ss:$0 sm:$0xff] }
  0x17   : > { %v972_v42 = vld [vmem:[%s1523_s9] ss:$0 sm:$0xff] }
  0x18   : > { %1131 = vmatpush3.bf16.msra.mxu0 %v1130_v19  ;;  %1143 = vmatpush3.bf16.msra.mxu1 %v1142_v32  ;;  %v764_v19 = vld [vmem:[%s1524_s10 + $0x38] sm:$0xff]  ;;  %v771_v32 = vld [vmem:[%s1524_s10 + $0x70] sm:$0xff]  ;;  %v973_v46 = vld [vmem:[%s1525_s11] ss:$0 sm:$0xff] }
  0x19   : > { %1156 = vmatprep.subr.bf16.mxu0 %v1210_v3  ;;  %1144 = vmatprep.subr.bf16.mxu1 %v1210_v3  ;;  %v1178_v34 = vpack.c.bf16 %v772_v33, %v771_v32  ;;  %v975_v0 = vld [vmem:[%s1527_s13] ss:$0 sm:$0xff] }
  0x1a   : > { %v976_v2 = vld [vmem:[%s1528_s14] ss:$0 sm:$0xff] }
  0x1b   : > { %1045 = vmatmul.mubr.msk.f32.vlgmr.msra.gmra.mrb[0].mxu0 %vm530_vm1, %v512_v20 }
  0x1c   : > { %1114 = vmatprep.mubr.msk.f32.mxu0 %vm1211_vm0, %v1212_v6  ;;  %1146 = vmatpush3.bf16.msra.mxu1 %v1145_v35  ;;  %v763_v6 = vld [vmem:[%s1524_s10 + $0x30] sm:$0xff]  ;;  %v1215_v35 = vmov 2  }
  0x1d   : > { %1147 = vmatprep.subr.bf16.mxu1 %v1210_v3  ;;  %1158 = vmatpush3.bf16.msra.mxu0 %v1157_v4  ;;  %v1166_v20 = vpack.c.bf16 %v764_v19, %v763_v6 }
  0x1e   : > { %1159 = vmatprep.subr.bf16.mxu0 %v1210_v3  ;;  %1196 = vset.pattern.permute.xlu1 %v1215_v35 }
  0x1f   : > { %1197 = vset.pattern.permute.xlu0 %v1215_v35 }
  0x20   : > { %1149 = vmatpush3.bf16.msra.mxu1 %v1148_v39  ;;  %v969_v39 = vld [vmem:[%s1518_s4] ss:$0 sm:$0xff] }
  0x21   : > { %1150 = vmatprep.subr.bf16.mxu1 %v1210_v3  ;;  %1161 = vmatpush3.bf16.msra.mxu0 %v1160_v7 }
  0x22   : > { %1162 = vmatprep.subr.bf16.mxu0 %v1210_v3 }
  0x24   : > { %1152 = vmatpush3.bf16.msra.mxu1 %v1151_v43 }
  0x25   : > { %1153 = vmatprep.subr.bf16.mxu1 %v1210_v3  ;;  %1164 = vmatpush3.bf16.msra.mxu0 %v1163_v18 }
  0x26   : > { %1165 = vmatprep.subr.bf16.mxu0 %v1210_v3 }
  0x28   : > { %1155 = vmatpush3.bf16.msra.mxu1 %v1154_v49 }
  0x29   : > { %1167 = vmatpush3.bf16.msra.mxu0 %v1166_v20 }
  0x2a   : > { %1168 = vmatprep.subr.bf16.mxu0 %v1210_v3 }
  0x2d   : > { %1170 = vmatpush3.bf16.msra.mxu0 %v1169_v23 }
  0x2e   : > { %1171 = vmatprep.subr.bf16.mxu0 %v1210_v3 }
  0x31   : > { %1173 = vmatpush3.bf16.msra.mxu0 %v1172_v26 }
  0x32   : > { %1174 = vmatprep.subr.bf16.mxu0 %v1210_v3 }
  0x35   : > { %1176 = vmatpush3.bf16.msra.mxu0 %v1175_v31 }
  0x36   : > { %1177 = vmatprep.subr.bf16.mxu0 %v1210_v3 }
  0x39   : > { %1179 = vmatpush3.bf16.msra.mxu0 %v1178_v34 }
  0x90   : > { %v637_v51 = vpop.permute.xlu0 %636 }
  0x91   : > { %v643_v53 = vmul.f32 %v642_v50, %v637_v51  ;;  %v974_v50 = vld [vmem:[%s1526_s12] ss:$0 sm:$0xff] }
  0x95   : > { %v646_v54 = vpop.permute.xlu0 %645 }
  0x96   : > { %v652_v55 = vmul.f32 %v651_v52, %v646_v54 }
  0x98   : > { %v653_v57 = vadd.f32 %v652_v55, %v643_v53 }
  0x9a   : > { %v661_v58 = vadd.f32 %v971_v56, %v653_v57 }
  0x9c   : > { %v662_v59 = vmax.f32 %v661_v58, 0.0 }
  0x9e   : > { %1080 = vmatmul.mubr.f32.vlgmr.msra.gmra.mrb[0].mxu1 %v662_v59 }
  0xee   : > { %v600_v61 = vpop.f32.mrb[0].mxu0 }
  0xef   : > { %v601_v62 = vadd.f32 %v967_v60, %v600_v61  ;;  %v1046_v63 = vpop.f32.mrb[1].mxu0 }
  0xf1   : > { %606 = vadd.xlane.f32.xlu1 %v601_v62 }
 0x171   : > { %v752_v27 = vpop.f32.mrb[0].mxu1 }
 0x172   : > { %v1081_v28 = vpop.f32.mrb[1].mxu1  ;;  %v753_v44 = vadd.f32 %v972_v42, %v752_v27 }
 0x17e   : > { %v607_v9 = vpop.xlane.xlu1 %606 }
 0x17f   : > { %v608_v10 = vmul.f32 0.03125, %v607_v9 }
 0x181   : > { %v609_v12 = vsub.f32 %v601_v62, %v608_v10 }
 0x183   : > { %v610_v13 = vmul.f32 %v1440_v11, %v609_v12 }
 0x185   : > { %v611_v15 = vmul.f32 %v610_v13, %v610_v13 }
 0x187   : > { %612 = vadd.xlane.f32.xlu1 %v611_v15 }
 0x198   : > { %775 = vperm.xlu1 %1196, %v1342_v14  }
 0x214   : > { %v613_v36 = vpop.xlane.xlu1 %612 }
 0x215   : > { %v614_v37 = vmul.f32 0.03125, %v613_v36 }
 0x217   : > { %v615_v38 = vadd.f32 1e-05, %v614_v37 }
 0x218   : > { %v776_v47 = vpop.permute.xlu1 %775 }
 0x219   : > { %1198 = vrsqrt.f32 %v615_v38  ;;  %v784_v48 = vmul.f32 %v973_v46, %v776_v47 }
 0x223   : > { %v1199_v3 = vpop.eup %1198 }
 0x224   : > { %v617_v40 = vmul.f32 %v1199_v3, %v610_v13 }
 0x226   : > { %v624_v43 = vmul.f32 %v969_v39, %v617_v40 }
 0x228   : > { %v631_v14 = vadd.f32 %v970_v41, %v624_v43 }
 0x22a   : > { %v756_v45 = vadd.f32 %v753_v44, %v631_v14 }
 0x22c   : > { %1115 = vmatmul.mubr.f32.vlgmr.msra.gmra.mrb[2].mxu0 %v756_v45 }
 0x2ff   : > { %v851_v49 = vpop.f32.mrb[2].mxu0 }
 0x300   : > { %v852_v51 = vadd.f32 %v851_v49, %v784_v48  ;;  %v1116_v52 = vpop.f32.mrb[3].mxu0 }
 0x302   : > { %v862_v53 = vadd.f32 %v974_v50, %v852_v51 }
 0x304   : > { %v863_v54 = vmax.f32 %v862_v53, 0.0 }
 0x306   : > { %866 = vadd.xlane.f32.xlu0 %v863_v54 }
 0x393   : > { %v867_v55 = vpop.xlane.xlu0 %866 }
 0x394   : > { %v868_v56 = vmul.f32 0.03125, %v867_v55 }
 0x396   : > { %v869_v57 = vsub.f32 %v863_v54, %v868_v56 }
 0x398   : > { %v870_v58 = vmul.f32 %v1440_v11, %v869_v57 }
 0x39a   : > { %v871_v59 = vmul.f32 %v870_v58, %v870_v58 }
 0x39c   : > { %872 = vadd.xlane.f32.xlu1 %v871_v59 }
 0x429   : > { %v873_v60 = vpop.xlane.xlu1 %872 }
 0x42a   : > { %v874_v61 = vmul.f32 0.03125, %v873_v60 }
 0x42c   : > { %v875_v62 = vadd.f32 1e-05, %v874_v61 }
 0x42e   : > { %1200 = vrsqrt.f32 %v875_v62 }
 0x438   : > { %v1201_v63 = vpop.eup %1200 }
 0x439   : > { %v877_v1 = vmul.f32 %v1201_v63, %v870_v58 }
 0x43b   : > { %v884_v4 = vmul.f32 %v975_v0, %v877_v1 }
 0x43d   : > { %v891_v5 = vadd.f32 %v976_v2, %v884_v4 }
 0x43f   : > { %892 = vst [vmem:[%s506_s28] sm:$0xff] %v891_v5 }
 0x440 PF: > { %s25_s18 = sadd.s32 1, %s1208_s18  }
 0x441   : > { %p22_p4 = scmp.ge.s32.totalorder %s25_s18, 4  }
 0x443   :  { %24 = sbr.rel (!%p22_p4) target bundleno = 1 (0x1), region = 113 }

</bundles_post_ra>
